<compile_context>
chip_gen: v7x
topology: tpu7x:2x2x1
jax: 0.10.0
libtpu: 0.0.40
codegen_flags: <defaults>
</compile_context>

<pallas_src>
import functools

import jax
import jax.numpy as jnp
from jax import lax
from jax.experimental import pallas as pl
from jax.experimental.pallas import tpu as pltpu


def _lstm_sim_kernel(x_ref, w_ih_ref, w_hh_ref, b_ref, gmul_ref, gadd_ref,
                     w_out_ref, b_out_ref, out_ref, xg_ref, h_all_ref,
                     *, T, B):
    """Full LSTMCell + Linear recurrence over the sequence.

    x_ref:     (T*B, I)     time-major, batch-padded, flattened input
    w_ih_ref:  (I, 4H)      input->gates weights (g-block pre-scaled by 2)
    w_hh_ref:  (H, 4H)      hidden->gates weights (g-block pre-scaled by 2)
    b_ref:     (1, 4H)      combined bias b_ih+b_hh (g-block pre-scaled by 2)
    gmul_ref:  (1, 4H)      per-lane post-sigmoid multiplier [1,1,2,1] blocks
    gadd_ref:  (1, 4H)      per-lane post-sigmoid addend    [0,0,-1,0] blocks
    w_out_ref: (H, O_pad)   output projection, zero-padded to 128 lanes
    b_out_ref: (1, O_pad)   output bias, zero-padded
    out_ref:   (T*B, O_pad) flattened time-major output (lane-dense)
    xg_ref:    (T*B, 4H)    VMEM scratch: precomputed input->gates pre-acts
    h_all_ref: (T*B, H)     VMEM scratch: hidden states for all timesteps
    """
    H = w_hh_ref.shape[0]
    I = x_ref.shape[1]
    G = 4 * H

    # Hoisted parameter loads / broadcasts (once, not per unrolled step).
    w_hh = w_hh_ref[...]                                    # (H, 4H)
    gmul = jnp.broadcast_to(gmul_ref[...], (B, G))          # [1,1,2,1] blocks
    gadd = jnp.broadcast_to(gadd_ref[...], (B, G))          # [0,0,-1,0] blocks

    # Input->gates precompute for ALL timesteps.  I is tiny (1 here), so this
    # is a rank-I sum of broadcast outer products on the VPU: no MXU pass or
    # result-FIFO drain serializing ahead of the recurrence.
    xg = x_ref[:, 0:1] * w_ih_ref[0:1, :] + b_ref[...]
    for i in range(1, I):                                   # static, tiny
        xg = xg + x_ref[:, i:i + 1] * w_ih_ref[i:i + 1, :]
    xg_ref[...] = xg

    def step(t, carry):
        h, c = carry
        row = pl.multiple_of(t * B, B)  # valid: B asserted multiple of 8

        # Only h @ W_hh remains on the serial critical path.
        # TODO(synk): keep W_hh resident in the MXU across steps via
        # pltpu.matmul_push_rhs / matmul_acc_lhs / matmul_pop to avoid
        # re-pushing the (32,128) RHS every step.
        gates = xg_ref[pl.ds(row, B), :] + jnp.dot(
            h, w_hh, preferred_element_type=jnp.float32)    # (B, 4H)

        # Single full-vreg sigmoid (one EUP push) + cheap per-lane affine:
        # the g block was pre-scaled by 2, so tanh(z) = 2*sigmoid(2z) - 1.
        act = jax.nn.sigmoid(gates) * gmul + gadd
        i_g = act[:, 0:H]
        f_g = act[:, H:2 * H]
        g_g = act[:, 2 * H:3 * H]
        o_g = act[:, 3 * H:4 * H]

        c_new = f_g * c + i_g * g_g
        h_new = o_g * jnp.tanh(c_new)

        # Defer the H->O projection: just stash h_t.
        h_all_ref[pl.ds(row, B), :] = h_new
        return (h_new, c_new)

    h0 = jnp.zeros((B, H), dtype=jnp.float32)
    c0 = jnp.zeros((B, H), dtype=jnp.float32)
    # Fully unrolled: T is small and static; cross-step visibility lets the
    # scheduler overlap everything except the h/c dependency chain.
    lax.fori_loop(0, T, step, (h0, c0), unroll=True)

    # One post-loop projection + one lane-dense (128-wide) unmasked slab store.
    out_ref[...] = (
        jnp.dot(h_all_ref[...], w_out_ref[...],
                preferred_element_type=jnp.float32)
        + b_out_ref[...])


@jax.jit
def lstm_simulator(x, w_ih, w_hh, b_ih, b_hh, w_lin, b_lin):
    """x: (B, T, I) float32. Returns (B, T, O) float32.

    Weight conventions match torch.nn.LSTMCell / nn.Linear:
      w_ih: (4H, I), w_hh: (4H, H), b_ih/b_hh: (4H,)  gate order [i, f, g, o]
      w_lin: (O, H), b_lin: (O,)
    """
    B, T, I = x.shape
    H = w_hh.shape[1]
    O = w_lin.shape[0]
    B_pad = max(8, ((B + 7) // 8) * 8)        # pad batch to a sublane multiple
    assert B_pad % 8 == 0                     # pl.multiple_of hint relies on it
    O_pad = max(128, ((O + 127) // 128) * 128)  # lane-dense output width

    # Time-major, batch-padded, flattened: (T*B_pad, I).
    # TODO(synk): at scale, drop this transpose/pad and deliver per-time slabs
    # via a BlockSpec index_map on a T-blocked grid.
    x_tm = jnp.transpose(x, (1, 0, 2)).astype(jnp.float32)   # (T, B, I)
    if B_pad != B:
        x_tm = jnp.pad(x_tm, ((0, 0), (0, B_pad - B), (0, 0)))
    x_flat = x_tm.reshape(T * B_pad, I)

    # Fold the tanh -> sigmoid rewrite into the parameters: the g-gate columns
    # ([2H:3H] block) of W_ih, W_hh and the combined bias get a factor 2, and
    # the per-lane post-affine (gmul, gadd) finishes tanh(z)=2*sigmoid(2z)-1.
    g_scale = jnp.concatenate([jnp.ones((2 * H,), jnp.float32),
                               jnp.full((H,), 2.0, jnp.float32),
                               jnp.ones((H,), jnp.float32)])            # (4H,)
    g_shift = jnp.concatenate([jnp.zeros((2 * H,), jnp.float32),
                               jnp.full((H,), -1.0, jnp.float32),
                               jnp.zeros((H,), jnp.float32)])           # (4H,)

    w_ih_t = jnp.transpose(w_ih).astype(jnp.float32) * g_scale[None, :]  # (I,4H)
    w_hh_t = jnp.transpose(w_hh).astype(jnp.float32) * g_scale[None, :]  # (H,4H)
    b = ((b_ih + b_hh).astype(jnp.float32) * g_scale).reshape(1, 4 * H)  # (1,4H)
    gmul = g_scale.reshape(1, 4 * H)
    gadd = g_shift.reshape(1, 4 * H)

    # Lane-dense output projection: zero-pad to O_pad (=128) columns.
    w_lin_t = jnp.zeros((H, O_pad), jnp.float32).at[:, :O].set(
        jnp.transpose(w_lin).astype(jnp.float32))                       # (H,O_pad)
    b_lin_r = jnp.zeros((1, O_pad), jnp.float32).at[:, :O].set(
        b_lin.astype(jnp.float32).reshape(1, O))                        # (1,O_pad)

    kernel = functools.partial(_lstm_sim_kernel, T=T, B=B_pad)
    vmem = pl.BlockSpec(memory_space=pltpu.MemorySpace.VMEM)

    out_flat = pl.pallas_call(
        kernel,
        out_shape=jax.ShapeDtypeStruct((T * B_pad, O_pad), jnp.float32),
        in_specs=[vmem] * 8,
        out_specs=vmem,
        scratch_shapes=[
            pltpu.VMEM((T * B_pad, 4 * H), jnp.float32),  # xg (input->gates)
            pltpu.VMEM((T * B_pad, H), jnp.float32),      # all hidden states
        ],
    )(x_flat, w_ih_t, w_hh_t, b, gmul, gadd, w_lin_t, b_lin_r)

    out = out_flat.reshape(T, B_pad, O_pad)[:, :B, :O]  # strip batch/lane pad
    return jnp.transpose(out, (1, 0, 2))                # (B, T, O)


def _reference(x, w_ih, w_hh, b_ih, b_hh, w_lin, b_lin):
    """Pure-JAX reference of the PyTorch forward pass (for validation)."""
    B, T, I = x.shape
    H = w_hh.shape[1]
    h = jnp.zeros((B, H), jnp.float32)
    c = jnp.zeros((B, H), jnp.float32)
    outs = []
    for t in range(T):
        x_t = x[:, t]
        gates = x_t @ w_ih.T + b_ih + h @ w_hh.T + b_hh
        i_g = jax.nn.sigmoid(gates[:, 0:H])
        f_g = jax.nn.sigmoid(gates[:, H:2 * H])
        g_g = jnp.tanh(gates[:, 2 * H:3 * H])
        o_g = jax.nn.sigmoid(gates[:, 3 * H:4 * H])
        c = f_g * c + i_g * g_g
        h = o_g * jnp.tanh(c)
        outs.append(h @ w_lin.T + b_lin)
    return jnp.stack(outs, axis=1)


if __name__ == "__main__":
    # Module hyperparameters (from __init__): n_input=1, n_hidden_1=32, n_output=1
    n_input, n_hidden, n_output = 1, 32, 1
    batch, seq_len = 2, 8

    key = jax.random.PRNGKey(0)
    ks = jax.random.split(key, 8)
    bound = 1.0 / jnp.sqrt(n_hidden)  # PyTorch default init range

    w_ih = jax.random.uniform(ks[0], (4 * n_hidden, n_input), jnp.float32, -bound, bound)
    w_hh = jax.random.uniform(ks[1], (4 * n_hidden, n_hidden), jnp.float32, -bound, bound)
    b_ih = jax.random.uniform(ks[2], (4 * n_hidden,), jnp.float32, -bound, bound)
    b_hh = jax.random.uniform(ks[3], (4 * n_hidden,), jnp.float32, -bound, bound)
    w_lin = jax.random.uniform(ks[4], (n_output, n_hidden), jnp.float32, -bound, bound)
    b_lin = jax.random.uniform(ks[5], (n_output,), jnp.float32, -bound, bound)

    x = jax.random.normal(ks[6], (batch, seq_len, n_input), jnp.float32)

    out = lstm_simulator(x, w_ih, w_hh, b_ih, b_hh, w_lin, b_lin)
    out = jax.block_until_ready(out)

    ref = _reference(x, w_ih, w_hh, b_ih, b_hh, w_lin, b_lin)
    assert out.shape == (batch, seq_len, n_output), out.shape
    # tanh(z) == 2*sigmoid(2z)-1 exactly; tolerance only covers a few-ULP
    # difference between the hardware tanh and sigmoid approximations.
    assert jnp.allclose(out, ref, atol=1e-4, rtol=1e-4), (
        float(jnp.max(jnp.abs(out - ref))))

    print("KERNEL_OK")
</pallas_src>

<mosaic_0001>
module attributes {stable_mosaic.version = 11 : i64} {
  func.func @_lstm_sim_kernel(%arg0: memref<64x1xf32, #tpu.memory_space<vmem>>, %arg1: memref<1x128xf32, #tpu.memory_space<vmem>>, %arg2: memref<32x128xf32, #tpu.memory_space<vmem>>, %arg3: memref<1x128xf32, #tpu.memory_space<vmem>>, %arg4: memref<1x128xf32, #tpu.memory_space<vmem>>, %arg5: memref<1x128xf32, #tpu.memory_space<vmem>>, %arg6: memref<32x128xf32, #tpu.memory_space<vmem>>, %arg7: memref<1x128xf32, #tpu.memory_space<vmem>>, %arg8: memref<64x128xf32, #tpu.memory_space<vmem>>, %arg9: memref<64x128xf32, #tpu.memory_space<vmem>>, %arg10: memref<64x32xf32, #tpu.memory_space<vmem>>) attributes {dimension_semantics = [], scalar_prefetch = 0 : i64, scratch_operands = 2 : i64, tpu.core_type = #tpu.core_type<tc>} {
    %c0 = arith.constant 0 : index
    %c0_0 = arith.constant 0 : index
    %0 = vector.load %arg2[%c0, %c0_0] : memref<32x128xf32, #tpu.memory_space<vmem>>, vector<32x128xf32>
    %c0_1 = arith.constant 0 : index
    %c0_2 = arith.constant 0 : index
    %1 = vector.load %arg4[%c0_1, %c0_2] : memref<1x128xf32, #tpu.memory_space<vmem>>, vector<1x128xf32>
    %2 = vector.shape_cast %1 : vector<1x128xf32> to vector<1x128xf32>
    %3 = vector.broadcast %2 : vector<1x128xf32> to vector<8x128xf32>
    %c0_3 = arith.constant 0 : index
    %c0_4 = arith.constant 0 : index
    %4 = vector.load %arg5[%c0_3, %c0_4] : memref<1x128xf32, #tpu.memory_space<vmem>>, vector<1x128xf32>
    %5 = vector.shape_cast %4 : vector<1x128xf32> to vector<1x128xf32>
    %6 = vector.broadcast %5 : vector<1x128xf32> to vector<8x128xf32>
    %c0_5 = arith.constant 0 : index
    %c0_6 = arith.constant 0 : index
    %7 = vector.load %arg0[%c0_5, %c0_6] : memref<64x1xf32, #tpu.memory_space<vmem>>, vector<64x1xf32>
    %c0_7 = arith.constant 0 : index
    %c0_8 = arith.constant 0 : index
    %8 = vector.load %arg1[%c0_7, %c0_8] : memref<1x128xf32, #tpu.memory_space<vmem>>, vector<1x128xf32>
    %9 = vector.broadcast %7 : vector<64x1xf32> to vector<64x128xf32>
    %10 = vector.broadcast %8 : vector<1x128xf32> to vector<64x128xf32>
    %11 = arith.mulf %9, %10 : vector<64x128xf32>
    %c0_9 = arith.constant 0 : index
    %c0_10 = arith.constant 0 : index
    %12 = vector.load %arg3[%c0_9, %c0_10] : memref<1x128xf32, #tpu.memory_space<vmem>>, vector<1x128xf32>
    %13 = vector.broadcast %12 : vector<1x128xf32> to vector<64x128xf32>
    %14 = arith.addf %11, %13 : vector<64x128xf32>
    %c0_11 = arith.constant 0 : index
    %c0_12 = arith.constant 0 : index
    %15 = vector.load %arg9[%c0_11, %c0_12] : memref<64x128xf32, #tpu.memory_space<vmem>>, vector<64x128xf32>
    tpu.vector_store %arg9[%c0_11, %c0_12], %14 {strides = array<i32>} : memref<64x128xf32, #tpu.memory_space<vmem>>, vector<64x128xf32>,
    %cst = arith.constant 0.000000e+00 : f32
    %16 = vector.broadcast %cst : f32 to vector<8x32xf32>
    %cst_13 = arith.constant 0.000000e+00 : f32
    %17 = vector.broadcast %cst_13 : f32 to vector<8x32xf32>
    %c0_i32 = arith.constant 0 : i32
    %c8_i32 = arith.constant 8 : i32
    %18 = arith.muli %c0_i32, %c8_i32 : i32
    %19 = tpu.assume_multiple %18, 8 : i32
    %20 = arith.index_cast %19 : i32 to index
    %c0_14 = arith.constant 0 : index
    %21 = vector.load %arg9[%20, %c0_14] : memref<64x128xf32, #tpu.memory_space<vmem>>, vector<8x128xf32>
    %cst_15 = arith.constant dense<0.000000e+00> : vector<8x128xf32>
    %22 = tpu.matmul %16, %0, %cst_15 {dimension_numbers = #tpu.dot_dimension_numbers<[1], [0], [0], [1], [0, 0, 1, 1], [], []>} : vector<8x32xf32>, vector<32x128xf32>, vector<8x128xf32> -> vector<8x128xf32>
    %23 = arith.addf %21, %22 : vector<8x128xf32>
    %24 = arith.negf %23 : vector<8x128xf32>
    %25 = math.exp %24 : vector<8x128xf32>
    %cst_16 = arith.constant 1.000000e+00 : f32
    %26 = vector.broadcast %cst_16 : f32 to vector<8x128xf32>
    %27 = arith.addf %26, %25 : vector<8x128xf32>
    %28 = arith.divf %26, %27 : vector<8x128xf32>
    %29 = arith.mulf %28, %3 : vector<8x128xf32>
    %30 = arith.addf %29, %6 : vector<8x128xf32>
    %31 = vector.extract_strided_slice %30 {offsets = [0, 0], sizes = [8, 32], strides = [1, 1]} : vector<8x128xf32> to vector<8x32xf32>
    %32 = vector.extract_strided_slice %30 {offsets = [0, 32], sizes = [8, 32], strides = [1, 1]} : vector<8x128xf32> to vector<8x32xf32>
    %33 = vector.extract_strided_slice %30 {offsets = [0, 64], sizes = [8, 32], strides = [1, 1]} : vector<8x128xf32> to vector<8x32xf32>
    %34 = vector.extract_strided_slice %30 {offsets = [0, 96], sizes = [8, 32], strides = [1, 1]} : vector<8x128xf32> to vector<8x32xf32>
    %35 = arith.mulf %32, %17 : vector<8x32xf32>
    %36 = arith.mulf %31, %33 : vector<8x32xf32>
    %37 = arith.addf %35, %36 : vector<8x32xf32>
    %38 = math.tanh %37 : vector<8x32xf32>
    %39 = arith.mulf %34, %38 : vector<8x32xf32>
    %40 = arith.index_cast %19 : i32 to index
    %c0_17 = arith.constant 0 : index
    %41 = vector.load %arg10[%40, %c0_17] : memref<64x32xf32, #tpu.memory_space<vmem>>, vector<8x32xf32>
    tpu.vector_store %arg10[%40, %c0_17], %39 {strides = array<i32>} : memref<64x32xf32, #tpu.memory_space<vmem>>, vector<8x32xf32>,
    %c1_i32 = arith.constant 1 : i32
    %c8_i32_18 = arith.constant 8 : i32
    %42 = arith.muli %c1_i32, %c8_i32_18 : i32
    %43 = tpu.assume_multiple %42, 8 : i32
    %44 = arith.index_cast %43 : i32 to index
    %c0_19 = arith.constant 0 : index
    %45 = vector.load %arg9[%44, %c0_19] : memref<64x128xf32, #tpu.memory_space<vmem>>, vector<8x128xf32>
    %cst_20 = arith.constant dense<0.000000e+00> : vector<8x128xf32>
    %46 = tpu.matmul %39, %0, %cst_20 {dimension_numbers = #tpu.dot_dimension_numbers<[1], [0], [0], [1], [0, 0, 1, 1], [], []>} : vector<8x32xf32>, vector<32x128xf32>, vector<8x128xf32> -> vector<8x128xf32>
    %47 = arith.addf %45, %46 : vector<8x128xf32>
    %48 = arith.negf %47 : vector<8x128xf32>
    %49 = math.exp %48 : vector<8x128xf32>
    %cst_21 = arith.constant 1.000000e+00 : f32
    %50 = vector.broadcast %cst_21 : f32 to vector<8x128xf32>
    %51 = arith.addf %50, %49 : vector<8x128xf32>
    %52 = arith.divf %50, %51 : vector<8x128xf32>
    %53 = arith.mulf %52, %3 : vector<8x128xf32>
    %54 = arith.addf %53, %6 : vector<8x128xf32>
    %55 = vector.extract_strided_slice %54 {offsets = [0, 0], sizes = [8, 32], strides = [1, 1]} : vector<8x128xf32> to vector<8x32xf32>
    %56 = vector.extract_strided_slice %54 {offsets = [0, 32], sizes = [8, 32], strides = [1, 1]} : vector<8x128xf32> to vector<8x32xf32>
    %57 = vector.extract_strided_slice %54 {offsets = [0, 64], sizes = [8, 32], strides = [1, 1]} : vector<8x128xf32> to vector<8x32xf32>
    %58 = vector.extract_strided_slice %54 {offsets = [0, 96], sizes = [8, 32], strides = [1, 1]} : vector<8x128xf32> to vector<8x32xf32>
    %59 = arith.mulf %56, %37 : vector<8x32xf32>
    %60 = arith.mulf %55, %57 : vector<8x32xf32>
    %61 = arith.addf %59, %60 : vector<8x32xf32>
    %62 = math.tanh %61 : vector<8x32xf32>
    %63 = arith.mulf %58, %62 : vector<8x32xf32>
    %64 = arith.index_cast %43 : i32 to index
    %c0_22 = arith.constant 0 : index
    %65 = vector.load %arg10[%64, %c0_22] : memref<64x32xf32, #tpu.memory_space<vmem>>, vector<8x32xf32>
    tpu.vector_store %arg10[%64, %c0_22], %63 {strides = array<i32>} : memref<64x32xf32, #tpu.memory_space<vmem>>, vector<8x32xf32>,
    %c2_i32 = arith.constant 2 : i32
    %c8_i32_23 = arith.constant 8 : i32
    %66 = arith.muli %c2_i32, %c8_i32_23 : i32
    %67 = tpu.assume_multiple %66, 8 : i32
    %68 = arith.index_cast %67 : i32 to index
    %c0_24 = arith.constant 0 : index
    %69 = vector.load %arg9[%68, %c0_24] : memref<64x128xf32, #tpu.memory_space<vmem>>, vector<8x128xf32>
    %cst_25 = arith.constant dense<0.000000e+00> : vector<8x128xf32>
    %70 = tpu.matmul %63, %0, %cst_25 {dimension_numbers = #tpu.dot_dimension_numbers<[1], [0], [0], [1], [0, 0, 1, 1], [], []>} : vector<8x32xf32>, vector<32x128xf32>, vector<8x128xf32> -> vector<8x128xf32>
    %71 = arith.addf %69, %70 : vector<8x128xf32>
    %72 = arith.negf %71 : vector<8x128xf32>
    %73 = math.exp %72 : vector<8x128xf32>
    %cst_26 = arith.constant 1.000000e+00 : f32
    %74 = vector.broadcast %cst_26 : f32 to vector<8x128xf32>
    %75 = arith.addf %74, %73 : vector<8x128xf32>
    %76 = arith.divf %74, %75 : vector<8x128xf32>
    %77 = arith.mulf %76, %3 : vector<8x128xf32>
    %78 = arith.addf %77, %6 : vector<8x128xf32>
    %79 = vector.extract_strided_slice %78 {offsets = [0, 0], sizes = [8, 32], strides = [1, 1]} : vector<8x128xf32> to vector<8x32xf32>
    %80 = vector.extract_strided_slice %78 {offsets = [0, 32], sizes = [8, 32], strides = [1, 1]} : vector<8x128xf32> to vector<8x32xf32>
    %81 = vector.extract_strided_slice %78 {offsets = [0, 64], sizes = [8, 32], strides = [1, 1]} : vector<8x128xf32> to vector<8x32xf32>
    %82 = vector.extract_strided_slice %78 {offsets = [0, 96], sizes = [8, 32], strides = [1, 1]} : vector<8x128xf32> to vector<8x32xf32>
    %83 = arith.mulf %80, %61 : vector<8x32xf32>
    %84 = arith.mulf %79, %81 : vector<8x32xf32>
    %85 = arith.addf %83, %84 : vector<8x32xf32>
    %86 = math.tanh %85 : vector<8x32xf32>
    %87 = arith.mulf %82, %86 : vector<8x32xf32>
    %88 = arith.index_cast %67 : i32 to index
    %c0_27 = arith.constant 0 : index
    %89 = vector.load %arg10[%88, %c0_27] : memref<64x32xf32, #tpu.memory_space<vmem>>, vector<8x32xf32>
    tpu.vector_store %arg10[%88, %c0_27], %87 {strides = array<i32>} : memref<64x32xf32, #tpu.memory_space<vmem>>, vector<8x32xf32>,
    %c3_i32 = arith.constant 3 : i32
    %c8_i32_28 = arith.constant 8 : i32
    %90 = arith.muli %c3_i32, %c8_i32_28 : i32
    %91 = tpu.assume_multiple %90, 8 : i32
    %92 = arith.index_cast %91 : i32 to index
    %c0_29 = arith.constant 0 : index
    %93 = vector.load %arg9[%92, %c0_29] : memref<64x128xf32, #tpu.memory_space<vmem>>, vector<8x128xf32>
    %cst_30 = arith.constant dense<0.000000e+00> : vector<8x128xf32>
    %94 = tpu.matmul %87, %0, %cst_30 {dimension_numbers = #tpu.dot_dimension_numbers<[1], [0], [0], [1], [0, 0, 1, 1], [], []>} : vector<8x32xf32>, vector<32x128xf32>, vector<8x128xf32> -> vector<8x128xf32>
    %95 = arith.addf %93, %94 : vector<8x128xf32>
    %96 = arith.negf %95 : vector<8x128xf32>
    %97 = math.exp %96 : vector<8x128xf32>
    %cst_31 = arith.constant 1.000000e+00 : f32
    %98 = vector.broadcast %cst_31 : f32 to vector<8x128xf32>
    %99 = arith.addf %98, %97 : vector<8x128xf32>
    %100 = arith.divf %98, %99 : vector<8x128xf32>
    %101 = arith.mulf %100, %3 : vector<8x128xf32>
    %102 = arith.addf %101, %6 : vector<8x128xf32>
    %103 = vector.extract_strided_slice %102 {offsets = [0, 0], sizes = [8, 32], strides = [1, 1]} : vector<8x128xf32> to vector<8x32xf32>
    %104 = vector.extract_strided_slice %102 {offsets = [0, 32], sizes = [8, 32], strides = [1, 1]} : vector<8x128xf32> to vector<8x32xf32>
    %105 = vector.extract_strided_slice %102 {offsets = [0, 64], sizes = [8, 32], strides = [1, 1]} : vector<8x128xf32> to vector<8x32xf32>
    %106 = vector.extract_strided_slice %102 {offsets = [0, 96], sizes = [8, 32], strides = [1, 1]} : vector<8x128xf32> to vector<8x32xf32>
    %107 = arith.mulf %104, %85 : vector<8x32xf32>
    %108 = arith.mulf %103, %105 : vector<8x32xf32>
    %109 = arith.addf %107, %108 : vector<8x32xf32>
    %110 = math.tanh %109 : vector<8x32xf32>
    %111 = arith.mulf %106, %110 : vector<8x32xf32>
    %112 = arith.index_cast %91 : i32 to index
    %c0_32 = arith.constant 0 : index
    %113 = vector.load %arg10[%112, %c0_32] : memref<64x32xf32, #tpu.memory_space<vmem>>, vector<8x32xf32>
    tpu.vector_store %arg10[%112, %c0_32], %111 {strides = array<i32>} : memref<64x32xf32, #tpu.memory_space<vmem>>, vector<8x32xf32>,
    %c4_i32 = arith.constant 4 : i32
    %c8_i32_33 = arith.constant 8 : i32
    %114 = arith.muli %c4_i32, %c8_i32_33 : i32
    %115 = tpu.assume_multiple %114, 8 : i32
    %116 = arith.index_cast %115 : i32 to index
    %c0_34 = arith.constant 0 : index
    %117 = vector.load %arg9[%116, %c0_34] : memref<64x128xf32, #tpu.memory_space<vmem>>, vector<8x128xf32>
    %cst_35 = arith.constant dense<0.000000e+00> : vector<8x128xf32>
    %118 = tpu.matmul %111, %0, %cst_35 {dimension_numbers = #tpu.dot_dimension_numbers<[1], [0], [0], [1], [0, 0, 1, 1], [], []>} : vector<8x32xf32>, vector<32x128xf32>, vector<8x128xf32> -> vector<8x128xf32>
    %119 = arith.addf %117, %118 : vector<8x128xf32>
    %120 = arith.negf %119 : vector<8x128xf32>
    %121 = math.exp %120 : vector<8x128xf32>
    %cst_36 = arith.constant 1.000000e+00 : f32
    %122 = vector.broadcast %cst_36 : f32 to vector<8x128xf32>
    %123 = arith.addf %122, %121 : vector<8x128xf32>
    %124 = arith.divf %122, %123 : vector<8x128xf32>
    %125 = arith.mulf %124, %3 : vector<8x128xf32>
    %126 = arith.addf %125, %6 : vector<8x128xf32>
    %127 = vector.extract_strided_slice %126 {offsets = [0, 0], sizes = [8, 32], strides = [1, 1]} : vector<8x128xf32> to vector<8x32xf32>
    %128 = vector.extract_strided_slice %126 {offsets = [0, 32], sizes = [8, 32], strides = [1, 1]} : vector<8x128xf32> to vector<8x32xf32>
    %129 = vector.extract_strided_slice %126 {offsets = [0, 64], sizes = [8, 32], strides = [1, 1]} : vector<8x128xf32> to vector<8x32xf32>
    %130 = vector.extract_strided_slice %126 {offsets = [0, 96], sizes = [8, 32], strides = [1, 1]} : vector<8x128xf32> to vector<8x32xf32>
    %131 = arith.mulf %128, %109 : vector<8x32xf32>
    %132 = arith.mulf %127, %129 : vector<8x32xf32>
    %133 = arith.addf %131, %132 : vector<8x32xf32>
    %134 = math.tanh %133 : vector<8x32xf32>
    %135 = arith.mulf %130, %134 : vector<8x32xf32>
    %136 = arith.index_cast %115 : i32 to index
    %c0_37 = arith.constant 0 : index
    %137 = vector.load %arg10[%136, %c0_37] : memref<64x32xf32, #tpu.memory_space<vmem>>, vector<8x32xf32>
    tpu.vector_store %arg10[%136, %c0_37], %135 {strides = array<i32>} : memref<64x32xf32, #tpu.memory_space<vmem>>, vector<8x32xf32>,
    %c5_i32 = arith.constant 5 : i32
    %c8_i32_38 = arith.constant 8 : i32
    %138 = arith.muli %c5_i32, %c8_i32_38 : i32
    %139 = tpu.assume_multiple %138, 8 : i32
    %140 = arith.index_cast %139 : i32 to index
    %c0_39 = arith.constant 0 : index
    %141 = vector.load %arg9[%140, %c0_39] : memref<64x128xf32, #tpu.memory_space<vmem>>, vector<8x128xf32>
    %cst_40 = arith.constant dense<0.000000e+00> : vector<8x128xf32>
    %142 = tpu.matmul %135, %0, %cst_40 {dimension_numbers = #tpu.dot_dimension_numbers<[1], [0], [0], [1], [0, 0, 1, 1], [], []>} : vector<8x32xf32>, vector<32x128xf32>, vector<8x128xf32> -> vector<8x128xf32>
    %143 = arith.addf %141, %142 : vector<8x128xf32>
    %144 = arith.negf %143 : vector<8x128xf32>
    %145 = math.exp %144 : vector<8x128xf32>
    %cst_41 = arith.constant 1.000000e+00 : f32
    %146 = vector.broadcast %cst_41 : f32 to vector<8x128xf32>
    %147 = arith.addf %146, %145 : vector<8x128xf32>
    %148 = arith.divf %146, %147 : vector<8x128xf32>
    %149 = arith.mulf %148, %3 : vector<8x128xf32>
    %150 = arith.addf %149, %6 : vector<8x128xf32>
    %151 = vector.extract_strided_slice %150 {offsets = [0, 0], sizes = [8, 32], strides = [1, 1]} : vector<8x128xf32> to vector<8x32xf32>
    %152 = vector.extract_strided_slice %150 {offsets = [0, 32], sizes = [8, 32], strides = [1, 1]} : vector<8x128xf32> to vector<8x32xf32>
    %153 = vector.extract_strided_slice %150 {offsets = [0, 64], sizes = [8, 32], strides = [1, 1]} : vector<8x128xf32> to vector<8x32xf32>
    %154 = vector.extract_strided_slice %150 {offsets = [0, 96], sizes = [8, 32], strides = [1, 1]} : vector<8x128xf32> to vector<8x32xf32>
    %155 = arith.mulf %152, %133 : vector<8x32xf32>
    %156 = arith.mulf %151, %153 : vector<8x32xf32>
    %157 = arith.addf %155, %156 : vector<8x32xf32>
    %158 = math.tanh %157 : vector<8x32xf32>
    %159 = arith.mulf %154, %158 : vector<8x32xf32>
    %160 = arith.index_cast %139 : i32 to index
    %c0_42 = arith.constant 0 : index
    %161 = vector.load %arg10[%160, %c0_42] : memref<64x32xf32, #tpu.memory_space<vmem>>, vector<8x32xf32>
    tpu.vector_store %arg10[%160, %c0_42], %159 {strides = array<i32>} : memref<64x32xf32, #tpu.memory_space<vmem>>, vector<8x32xf32>,
    %c6_i32 = arith.constant 6 : i32
    %c8_i32_43 = arith.constant 8 : i32
    %162 = arith.muli %c6_i32, %c8_i32_43 : i32
    %163 = tpu.assume_multiple %162, 8 : i32
    %164 = arith.index_cast %163 : i32 to index
    %c0_44 = arith.constant 0 : index
    %165 = vector.load %arg9[%164, %c0_44] : memref<64x128xf32, #tpu.memory_space<vmem>>, vector<8x128xf32>
    %cst_45 = arith.constant dense<0.000000e+00> : vector<8x128xf32>
    %166 = tpu.matmul %159, %0, %cst_45 {dimension_numbers = #tpu.dot_dimension_numbers<[1], [0], [0], [1], [0, 0, 1, 1], [], []>} : vector<8x32xf32>, vector<32x128xf32>, vector<8x128xf32> -> vector<8x128xf32>
    %167 = arith.addf %165, %166 : vector<8x128xf32>
    %168 = arith.negf %167 : vector<8x128xf32>
    %169 = math.exp %168 : vector<8x128xf32>
    %cst_46 = arith.constant 1.000000e+00 : f32
    %170 = vector.broadcast %cst_46 : f32 to vector<8x128xf32>
    %171 = arith.addf %170, %169 : vector<8x128xf32>
    %172 = arith.divf %170, %171 : vector<8x128xf32>
    %173 = arith.mulf %172, %3 : vector<8x128xf32>
    %174 = arith.addf %173, %6 : vector<8x128xf32>
    %175 = vector.extract_strided_slice %174 {offsets = [0, 0], sizes = [8, 32], strides = [1, 1]} : vector<8x128xf32> to vector<8x32xf32>
    %176 = vector.extract_strided_slice %174 {offsets = [0, 32], sizes = [8, 32], strides = [1, 1]} : vector<8x128xf32> to vector<8x32xf32>
    %177 = vector.extract_strided_slice %174 {offsets = [0, 64], sizes = [8, 32], strides = [1, 1]} : vector<8x128xf32> to vector<8x32xf32>
    %178 = vector.extract_strided_slice %174 {offsets = [0, 96], sizes = [8, 32], strides = [1, 1]} : vector<8x128xf32> to vector<8x32xf32>
    %179 = arith.mulf %176, %157 : vector<8x32xf32>
    %180 = arith.mulf %175, %177 : vector<8x32xf32>
    %181 = arith.addf %179, %180 : vector<8x32xf32>
    %182 = math.tanh %181 : vector<8x32xf32>
    %183 = arith.mulf %178, %182 : vector<8x32xf32>
    %184 = arith.index_cast %163 : i32 to index
    %c0_47 = arith.constant 0 : index
    %185 = vector.load %arg10[%184, %c0_47] : memref<64x32xf32, #tpu.memory_space<vmem>>, vector<8x32xf32>
    tpu.vector_store %arg10[%184, %c0_47], %183 {strides = array<i32>} : memref<64x32xf32, #tpu.memory_space<vmem>>, vector<8x32xf32>,
    %c7_i32 = arith.constant 7 : i32
    %c8_i32_48 = arith.constant 8 : i32
    %186 = arith.muli %c7_i32, %c8_i32_48 : i32
    %187 = tpu.assume_multiple %186, 8 : i32
    %188 = arith.index_cast %187 : i32 to index
    %c0_49 = arith.constant 0 : index
    %189 = vector.load %arg9[%188, %c0_49] : memref<64x128xf32, #tpu.memory_space<vmem>>, vector<8x128xf32>
    %cst_50 = arith.constant dense<0.000000e+00> : vector<8x128xf32>
    %190 = tpu.matmul %183, %0, %cst_50 {dimension_numbers = #tpu.dot_dimension_numbers<[1], [0], [0], [1], [0, 0, 1, 1], [], []>} : vector<8x32xf32>, vector<32x128xf32>, vector<8x128xf32> -> vector<8x128xf32>
    %191 = arith.addf %189, %190 : vector<8x128xf32>
    %192 = arith.negf %191 : vector<8x128xf32>
    %193 = math.exp %192 : vector<8x128xf32>
    %cst_51 = arith.constant 1.000000e+00 : f32
    %194 = vector.broadcast %cst_51 : f32 to vector<8x128xf32>
    %195 = arith.addf %194, %193 : vector<8x128xf32>
    %196 = arith.divf %194, %195 : vector<8x128xf32>
    %197 = arith.mulf %196, %3 : vector<8x128xf32>
    %198 = arith.addf %197, %6 : vector<8x128xf32>
    %199 = vector.extract_strided_slice %198 {offsets = [0, 0], sizes = [8, 32], strides = [1, 1]} : vector<8x128xf32> to vector<8x32xf32>
    %200 = vector.extract_strided_slice %198 {offsets = [0, 32], sizes = [8, 32], strides = [1, 1]} : vector<8x128xf32> to vector<8x32xf32>
    %201 = vector.extract_strided_slice %198 {offsets = [0, 64], sizes = [8, 32], strides = [1, 1]} : vector<8x128xf32> to vector<8x32xf32>
    %202 = vector.extract_strided_slice %198 {offsets = [0, 96], sizes = [8, 32], strides = [1, 1]} : vector<8x128xf32> to vector<8x32xf32>
    %203 = arith.mulf %200, %181 : vector<8x32xf32>
    %204 = arith.mulf %199, %201 : vector<8x32xf32>
    %205 = arith.addf %203, %204 : vector<8x32xf32>
    %206 = math.tanh %205 : vector<8x32xf32>
    %207 = arith.mulf %202, %206 : vector<8x32xf32>
    %208 = arith.index_cast %187 : i32 to index
    %c0_52 = arith.constant 0 : index
    %209 = vector.load %arg10[%208, %c0_52] : memref<64x32xf32, #tpu.memory_space<vmem>>, vector<8x32xf32>
    tpu.vector_store %arg10[%208, %c0_52], %207 {strides = array<i32>} : memref<64x32xf32, #tpu.memory_space<vmem>>, vector<8x32xf32>,
    %c8_i32_53 = arith.constant 8 : i32
    %c0_54 = arith.constant 0 : index
    %c0_55 = arith.constant 0 : index
    %210 = vector.load %arg10[%c0_54, %c0_55] : memref<64x32xf32, #tpu.memory_space<vmem>>, vector<64x32xf32>
    %c0_56 = arith.constant 0 : index
    %c0_57 = arith.constant 0 : index
    %211 = vector.load %arg6[%c0_56, %c0_57] : memref<32x128xf32, #tpu.memory_space<vmem>>, vector<32x128xf32>
    %cst_58 = arith.constant dense<0.000000e+00> : vector<64x128xf32>
    %212 = tpu.matmul %210, %211, %cst_58 {dimension_numbers = #tpu.dot_dimension_numbers<[1], [0], [0], [1], [0, 0, 1, 1], [], []>} : vector<64x32xf32>, vector<32x128xf32>, vector<64x128xf32> -> vector<64x128xf32>
    %c0_59 = arith.constant 0 : index
    %c0_60 = arith.constant 0 : index
    %213 = vector.load %arg7[%c0_59, %c0_60] : memref<1x128xf32, #tpu.memory_space<vmem>>, vector<1x128xf32>
    %214 = vector.broadcast %213 : vector<1x128xf32> to vector<64x128xf32>
    %215 = arith.addf %212, %214 : vector<64x128xf32>
    %c0_61 = arith.constant 0 : index
    %c0_62 = arith.constant 0 : index
    %216 = vector.load %arg8[%c0_61, %c0_62] : memref<64x128xf32, #tpu.memory_space<vmem>>, vector<64x128xf32>
    tpu.vector_store %arg8[%c0_61, %c0_62], %215 {strides = array<i32>} : memref<64x128xf32, #tpu.memory_space<vmem>>, vector<64x128xf32>,
    return
  }
}

</mosaic_0001>

<bundles_post_ra>
// kernel: lstm_simulator.1
= control target key start
LH: loop header
LB: loop body
LE: loop exit
PB: predicated region body
PF: predicated region fallthrough
CT: control target
= control target key end

     0   :  { %v1441_v0 = vmov 0.0|0.0   ;;  %vm1442_vm0 = vmmov 0   ;;  %v1443_v4 = vmov 0.0   ;;  %v1444_v7 = vmov 0   ;;  %s1446_s21 = smov 32   ;;  %s1741_s2 = inlined_call_operand.vmem [shape: f32[32,128], index: 2, kind: input, shape index: {}]   ;;  %s1742_s0 = inlined_call_operand.vmem [shape: f32[64,1], index: 0, kind: input, shape index: {}]   ;;  %s1743_s1 = inlined_call_operand.vmem [shape: f32[1,128], index: 1, kind: input, shape index: {}]   ;;  %s1744_s3 = inlined_call_operand.vmem [shape: f32[1,128], index: 3, kind: input, shape index: {}]   ;;  %s1745_s4 = inlined_call_operand.vmem [shape: f32[1,128], index: 4, kind: input, shape index: {}]   ;;  %s1746_s5 = inlined_call_operand.vmem [shape: f32[1,128], index: 5, kind: input, shape index: {}]   ;;  %s1747_s6 = inlined_call_operand.vmem [shape: f32[32,128], index: 6, kind: input, shape index: {}]   ;;  %s1748_s7 = inlined_call_operand.vmem [shape: f32[1,128], index: 7, kind: input, shape index: {}]   ;;  %s1749_s8 = inlined_call_operand.vmem [shape: f32[64,128], index: 8, kind: output, shape index: {}]  }
   0x1   :  { %1329 = vmatprep.subr.bf16.mxu1 %v1441_v0  ;;  %v29_v1 = vld [vmem:[%s1741_s2] sm:$0xff]  ;;  %v30_v2 = vld [vmem:[%s1741_s2 + $0x8] sm:$0xff]  ;;  %v31_v3 = vld [vmem:[%s1741_s2 + $0x10] sm:$0xff]  ;;  %1229 = vmatprep.mubr.msk.f32.mxu1 %vm1442_vm0, %v1443_v4  ;;  %vm134_vm1 = vcmask 261120  }
   0x2   :  { %v1504_v5 = vpack.c.bf16 %v30_v2, %v29_v1  ;;  %v32_v6 = vld [vmem:[%s1741_s2 + $0x18] sm:$0xff]  ;;  %1391 = vset.pattern.permute.xlu0 %v1444_v7  ;;  %v47_v8 = vld [vmem:[%s1742_s0] sm:$0xff]  ;;  %1392 = vset.pattern.permute.xlu1 %v1444_v7  ;;  %v48_v32 = vld [vmem:[%s1742_s0 + $0x8] sm:$0xff] }
   0x3   :  { %58 = vperm.xlu0 %1391, %v47_v8   ;;  %1341 = vmatprep.subr.bf16.mxu0 %v1441_v0  ;;  %v1514_v9 = vpack.c.bf16 %v32_v6, %v31_v3  ;;  %v1535_v10 = vld [vmem:[%s1743_s1] ss:$0 sm:$0xff]  ;;  %v49_v54 = vld [vmem:[%s1742_s0 + $0x10] sm:$0xff] }
   0x4   :  { %1331 = vmatpush3.bf16.msra.mxu1 %v1504_v5  ;;  %1343 = vmatpush3.bf16.msra.mxu0 %v1504_v5  ;;  %v1541_v13 = vld [vmem:[%s1744_s3] ss:$0 sm:$0xff]  ;;  %s1445_s3 = smov 64  }
   0x5   :  { %1332 = vmatprep.subr.bf16.mxu1 %v1441_v0  ;;  %1344 = vmatprep.subr.bf16.mxu0 %v1441_v0  ;;  %v1547_v21 = vld [vmem:[%s1745_s4] ss:$0 sm:$0xff] }
   0x6   :  { %1251 = vmatprep.mubr.msk.f32.mxu0 %vm1442_vm0, %v1443_v4  ;;  %v1552_v23 = vld [vmem:[%s1746_s5] ss:$0 sm:$0xff] }
   0x8   :  { %1334 = vmatpush3.bf16.msra.mxu1 %v1514_v9  ;;  %1346 = vmatpush3.bf16.msra.mxu0 %v1514_v9 }
   0x9   :  { %1335 = vmatprep.subr.bf16.mxu1 %v1441_v0  ;;  %1353 = vmatprep.subr.bf16.mxu0 %v1441_v0 }
   0xb   :  { %1230 = vmatmul.mubr.f32.vlgmr.msra.gmra.mrb[0].mxu1 %v1443_v4 }
   0xc   :  { %1337 = vmatpush3.bf16.msra.mxu1 %v1504_v5  ;;  %1240 = vmatprep.mubr.msk.f32.mxu1 %vm1442_vm0, %v1443_v4 }
   0xd   :  { %1338 = vmatprep.subr.bf16.mxu1 %v1441_v0 }
  0x10   :  { %1340 = vmatpush3.bf16.msra.mxu1 %v1514_v9 }
  0x11   :  { %1347 = vmatprep.subr.bf16.mxu1 %v1441_v0 }
  0x82   :  { %v59_v11 = vpop.permute.xlu0 %58 }
  0x83   :  { %v102_v12 = vmul.f32 %v1535_v10, %v59_v11 }
  0x85   :  { %v117_v14 = vadd.f32 %v1541_v13, %v102_v12 }
  0xde   :  { %v204_v15 = vpop.f32.mrb[0].mxu1 }
  0xdf   :  { %v208_v16 = vadd.f32 %v204_v15, %v117_v14  ;;  %v1231_v17 = vpop.f32.mrb[1].mxu1 }
  0xe1   :  { %v1145_v18 = vmul.f32 -1.442695, %v208_v16 }
  0xe3   :  { %1393 = vpow2.f32 %v1145_v18  ;;  %v50_v18 = vld [vmem:[%s1742_s0 + $0x18] sm:$0xff] }
  0xed   :  { %v1394_v19 = vpop.eup %1393 }
  0xee   :  { %v212_v20 = vadd.f32 1.0, %v1394_v19 }
  0xf0   :  { %1395 = vrcp.f32 %v212_v20 }
  0xfa   :  { %v1396_v22 = vpop.eup %1395 }
  0xfb   :  { %v215_v24 = vmul.f32 %v1396_v22, %v1547_v21 }
  0xfd   :  { %v216_v25 = vadd.f32 %v1552_v23, %v215_v24 }
  0xff   :  { %219 = vrot.lane.b32.xlu0 %v216_v25, %s1445_s3  ;;  %v217_v28 = vmul.f32 0.0, %v216_v25 }
 0x171   :  { %v220_v26 = vpop.permute.xlu0 %219 }
 0x172   :  { %v222_v27 = vmul.f32 %v220_v26, %v216_v25 }
 0x174   :  { %224 = vrot.lane.b32.xlu1 %v222_v27, %s1446_s21 }
 0x1e6   :  { %v225_v29 = vpop.permute.xlu1 %224 }
 0x1e7   :  { %v227_v30 = vadd.f32 %v225_v29, %v217_v28 }
 0x1e9   :  { %1397 = vtanh.f32 %v227_v30 }
 0x1f3   :  { %v1398_v31 = vpop.eup %1397 }
 0x1f4   :  { %230 = vrot.lane.b32.xlu1 %v1398_v31, %s1445_s3 }
 0x1f8   :  { %63 = vperm.xlu1 %1392, %v48_v32  }
 0x266   :  { %v231_v33 = vpop.permute.xlu1 %230 }
 0x267   :  { %v233_v34 = vmul.f32 %v231_v33, %v216_v25 }
 0x269   :  { %235 = vrot.lane.b32.xlu0 %v233_v34, %s1446_s21 }
 0x277   :  { %v64_v36 = vpop.permute.xlu1 %63 }
 0x278   :  { %v103_v37 = vmul.f32 %v1535_v10, %v64_v36 }
 0x27a   :  { %v118_v38 = vadd.f32 %v1541_v13, %v103_v37 }
 0x2db   :  { %v236_v35 = vpop.permute.xlu0 %235 }
 0x2dc   :  { %238 = vst.msk [vmem:[#allocation3] sm:$0xff] %vm134_vm1, %v236_v35  ;;  %1241 = vmatmul.mubr.msk.f32.vlgmr.msra.gmra.mrb[2].mxu1 %vm134_vm1, %v236_v35 }
 0x2dd   :  { %1349 = vmatpush3.bf16.msra.mxu1 %v1504_v5  ;;  %1262 = vmatprep.mubr.msk.f32.mxu1 %vm1442_vm0, %v1443_v4 }
 0x2de   :  { %1350 = vmatprep.subr.bf16.mxu1 %v1441_v0 }
 0x2e1   :  { %1352 = vmatpush3.bf16.msra.mxu1 %v1514_v9 }
 0x2e2   :  { %1359 = vmatprep.subr.bf16.mxu1 %v1441_v0 }
 0x3af   :  { %v309_v39 = vpop.f32.mrb[2].mxu1 }
 0x3b0   :  { %v313_v40 = vadd.f32 %v309_v39, %v118_v38  ;;  %v1242_v41 = vpop.f32.mrb[3].mxu1 }
 0x3b2   :  { %v1147_v42 = vmul.f32 -1.442695, %v313_v40 }
 0x3b4   :  { %1399 = vpow2.f32 %v1147_v42  ;;  %v51_v42 = vld [vmem:[%s1742_s0 + $0x20] sm:$0xff] }
 0x3be   :  { %v1400_v43 = vpop.eup %1399 }
 0x3bf   :  { %v317_v44 = vadd.f32 1.0, %v1400_v43 }
 0x3c1   :  { %1401 = vrcp.f32 %v317_v44 }
 0x3cb   :  { %v1402_v45 = vpop.eup %1401 }
 0x3cc   :  { %v320_v46 = vmul.f32 %v1402_v45, %v1547_v21 }
 0x3ce   :  { %v321_v47 = vadd.f32 %v1552_v23, %v320_v46 }
 0x3d0   :  { %324 = vrot.lane.b32.xlu0 %v321_v47, %s1445_s3  ;;  %v322_v50 = vmul.f32 %v321_v47, %v227_v30 }
 0x442   :  { %v325_v48 = vpop.permute.xlu0 %324 }
 0x443   :  { %v327_v49 = vmul.f32 %v325_v48, %v321_v47 }
 0x445   :  { %329 = vrot.lane.b32.xlu1 %v327_v49, %s1446_s21 }
 0x4b7   :  { %v330_v51 = vpop.permute.xlu1 %329 }
 0x4b8   :  { %v332_v52 = vadd.f32 %v330_v51, %v322_v50 }
 0x4ba   :  { %1403 = vtanh.f32 %v332_v52 }
 0x4c4   :  { %v1404_v53 = vpop.eup %1403 }
 0x4c5   :  { %335 = vrot.lane.b32.xlu0 %v1404_v53, %s1445_s3 }
 0x4c9   :  { %68 = vperm.xlu0 %1391, %v49_v54  }
 0x537   :  { %v336_v55 = vpop.permute.xlu0 %335 }
 0x538   :  { %v338_v56 = vmul.f32 %v336_v55, %v321_v47 }
 0x53a   :  { %340 = vrot.lane.b32.xlu1 %v338_v56, %s1446_s21 }
 0x548   :  { %v69_v58 = vpop.permute.xlu0 %68 }
 0x549   :  { %v104_v59 = vmul.f32 %v1535_v10, %v69_v58 }
 0x54b   :  { %v119_v60 = vadd.f32 %v1541_v13, %v104_v59 }
 0x5ac   :  { %v341_v57 = vpop.permute.xlu1 %340 }
 0x5ad   :  { %344 = vst.msk [vmem:[#allocation3 + $0x8] sm:$0xff] %vm134_vm1, %v341_v57  ;;  %1252 = vmatmul.mubr.msk.f32.vlgmr.msra.gmra.mrb[0].mxu0 %vm134_vm1, %v341_v57 }
 0x5ae   :  { %1355 = vmatpush3.bf16.msra.mxu0 %v1504_v5  ;;  %1273 = vmatprep.mubr.msk.f32.mxu0 %vm1442_vm0, %v1443_v4 }
 0x5af   :  { %1356 = vmatprep.subr.bf16.mxu0 %v1441_v0 }
 0x5b2   :  { %1358 = vmatpush3.bf16.msra.mxu0 %v1514_v9 }
 0x5b3   :  { %1365 = vmatprep.subr.bf16.mxu0 %v1441_v0 }
 0x680   :  { %v415_v61 = vpop.f32.mrb[0].mxu0 }
 0x681   :  { %v419_v62 = vadd.f32 %v415_v61, %v119_v60  ;;  %v1253_v63 = vpop.f32.mrb[1].mxu0 }
 0x683   :  { %v1149_v1 = vmul.f32 -1.442695, %v419_v62 }
 0x685   :  { %1405 = vpow2.f32 %v1149_v1  ;;  %v52_v1 = vld [vmem:[%s1742_s0 + $0x28] sm:$0xff] }
 0x68f   :  { %v1406_v2 = vpop.eup %1405 }
 0x690   :  { %v423_v3 = vadd.f32 1.0, %v1406_v2 }
 0x692   :  { %1407 = vrcp.f32 %v423_v3 }
 0x69c   :  { %v1408_v6 = vpop.eup %1407 }
 0x69d   :  { %v426_v7 = vmul.f32 %v1408_v6, %v1547_v21 }
 0x69f   :  { %v427_v8 = vadd.f32 %v1552_v23, %v426_v7 }
 0x6a1   :  { %430 = vrot.lane.b32.xlu1 %v427_v8, %s1445_s3  ;;  %v428_v14 = vmul.f32 %v427_v8, %v332_v52 }
 0x713   :  { %v431_v11 = vpop.permute.xlu1 %430 }
 0x714   :  { %v433_v12 = vmul.f32 %v431_v11, %v427_v8 }
 0x716   :  { %435 = vrot.lane.b32.xlu0 %v433_v12, %s1446_s21 }
 0x788   :  { %v436_v15 = vpop.permute.xlu0 %435 }
 0x789   :  { %v438_v16 = vadd.f32 %v436_v15, %v428_v14 }
 0x78b   :  { %1409 = vtanh.f32 %v438_v16 }
 0x795   :  { %v1410_v17 = vpop.eup %1409 }
 0x796   :  { %441 = vrot.lane.b32.xlu1 %v1410_v17, %s1445_s3 }
 0x79a   :  { %73 = vperm.xlu1 %1392, %v50_v18  }
 0x808   :  { %v442_v19 = vpop.permute.xlu1 %441 }
 0x809   :  { %v444_v20 = vmul.f32 %v442_v19, %v427_v8 }
 0x80b   :  { %446 = vrot.lane.b32.xlu0 %v444_v20, %s1446_s21 }
 0x819   :  { %v74_v24 = vpop.permute.xlu1 %73 }
 0x81a   :  { %v105_v25 = vmul.f32 %v1535_v10, %v74_v24 }
 0x81c   :  { %v120_v26 = vadd.f32 %v1541_v13, %v105_v25 }
 0x87d   :  { %v447_v22 = vpop.permute.xlu0 %446 }
 0x87e   :  { %450 = vst.msk [vmem:[#allocation3 + $0x10] sm:$0xff] %vm134_vm1, %v447_v22  ;;  %1263 = vmatmul.mubr.msk.f32.vlgmr.msra.gmra.mrb[4].mxu1 %vm134_vm1, %v447_v22 }
 0x87f   :  { %1361 = vmatpush3.bf16.msra.mxu1 %v1504_v5  ;;  %1284 = vmatprep.mubr.msk.f32.mxu1 %vm1442_vm0, %v1443_v4 }
 0x880   :  { %1362 = vmatprep.subr.bf16.mxu1 %v1441_v0 }
 0x883   :  { %1364 = vmatpush3.bf16.msra.mxu1 %v1514_v9 }
 0x884   :  { %1371 = vmatprep.subr.bf16.mxu1 %v1441_v0 }
 0x951   :  { %v521_v27 = vpop.f32.mrb[4].mxu1 }
 0x952   :  { %v525_v28 = vadd.f32 %v521_v27, %v120_v26  ;;  %v1264_v29 = vpop.f32.mrb[5].mxu1  ;;  %v53_v26 = vld [vmem:[%s1742_s0 + $0x30] sm:$0xff]  ;;  %v989_v27 = vld [vmem:[%s1747_s6] sm:$0xff] }
 0x954   :  { %v1151_v30 = vmul.f32 -1.442695, %v525_v28  ;;  %v990_v28 = vld [vmem:[%s1747_s6 + $0x8] sm:$0xff] }
 0x955   :  { %v1377_v29 = vpack.c.bf16 %v990_v28, %v989_v27 }
 0x956   :  { %1411 = vpow2.f32 %v1151_v30 }
 0x960   :  { %v1412_v31 = vpop.eup %1411 }
 0x961   :  { %v529_v32 = vadd.f32 1.0, %v1412_v31 }
 0x963   :  { %1413 = vrcp.f32 %v529_v32  ;;  %v991_v32 = vld [vmem:[%s1747_s6 + $0x10] sm:$0xff] }
 0x96d   :  { %v1414_v33 = vpop.eup %1413 }
 0x96e   :  { %v532_v34 = vmul.f32 %v1414_v33, %v1547_v21  ;;  %v992_v33 = vld [vmem:[%s1747_s6 + $0x18] sm:$0xff] }
 0x970   :  { %v533_v35 = vadd.f32 %v1552_v23, %v532_v34  ;;  %v1381_v34 = vpack.c.bf16 %v992_v33, %v991_v32 }
 0x972   :  { %536 = vrot.lane.b32.xlu0 %v533_v35, %s1445_s3  ;;  %v534_v38 = vmul.f32 %v533_v35, %v438_v16 }
 0x9e4   :  { %v537_v36 = vpop.permute.xlu0 %536 }
 0x9e5   :  { %v539_v37 = vmul.f32 %v537_v36, %v533_v35  ;;  %v981_v36 = vld [vmem:[#allocation3] sm:$0xff] }
 0x9e7   :  { %541 = vrot.lane.b32.xlu1 %v539_v37, %s1446_s21  ;;  %v982_v37 = vld [vmem:[#allocation3 + $0x8] sm:$0xff] }
 0xa59   :  { %v542_v39 = vpop.permute.xlu1 %541 }
 0xa5a   :  { %v544_v40 = vadd.f32 %v542_v39, %v534_v38  ;;  %v983_v38 = vld [vmem:[#allocation3 + $0x10] sm:$0xff] }
 0xa5c   :  { %1415 = vtanh.f32 %v544_v40 }
 0xa66   :  { %v1416_v41 = vpop.eup %1415 }
 0xa67   :  { %547 = vrot.lane.b32.xlu0 %v1416_v41, %s1445_s3 }
 0xa6b   :  { %78 = vperm.xlu0 %1391, %v51_v42  }
 0xad9   :  { %v548_v43 = vpop.permute.xlu0 %547 }
 0xada   :  { %v550_v44 = vmul.f32 %v548_v43, %v533_v35 }
 0xadc   :  { %552 = vrot.lane.b32.xlu1 %v550_v44, %s1446_s21 }
 0xaea   :  { %v79_v46 = vpop.permute.xlu0 %78 }
 0xaeb   :  { %v106_v47 = vmul.f32 %v1535_v10, %v79_v46 }
 0xaed   :  { %v121_v48 = vadd.f32 %v1541_v13, %v106_v47 }
 0xb4e   :  { %v553_v45 = vpop.permute.xlu1 %552 }
 0xb4f   :  { %556 = vst.msk [vmem:[#allocation3 + $0x18] sm:$0xff] %vm134_vm1, %v553_v45  ;;  %1274 = vmatmul.mubr.msk.f32.vlgmr.msra.gmra.mrb[2].mxu0 %vm134_vm1, %v553_v45 }
 0xb50   :  { %1367 = vmatpush3.bf16.msra.mxu0 %v1504_v5  ;;  %1295 = vmatprep.mubr.msk.f32.mxu0 %vm1442_vm0, %v1443_v4 }
 0xb51   :  { %1368 = vmatprep.subr.bf16.mxu0 %v1441_v0 }
 0xb54   :  { %1370 = vmatpush3.bf16.msra.mxu0 %v1514_v9 }
 0xb55   :  { %1378 = vmatprep.subr.bf16.mxu0 %v1377_v29 }
 0xb56   :  { %v984_v39 = vld [vmem:[#allocation3 + $0x18] sm:$0xff] }
 0xc22   :  { %v627_v49 = vpop.f32.mrb[2].mxu0 }
 0xc23   :  { %v631_v50 = vadd.f32 %v627_v49, %v121_v48  ;;  %v1275_v51 = vpop.f32.mrb[3].mxu0  ;;  %v1684_v49 = vld [vmem:[%s1748_s7] ss:$0 sm:$0xff] }
 0xc25   :  { %v1153_v52 = vmul.f32 -1.442695, %v631_v50 }
 0xc27   :  { %1417 = vpow2.f32 %v1153_v52 }
 0xc31   :  { %v1418_v53 = vpop.eup %1417 }
 0xc32   :  { %v635_v54 = vadd.f32 1.0, %v1418_v53 }
 0xc34   :  { %1419 = vrcp.f32 %v635_v54 }
 0xc3e   :  { %v1420_v55 = vpop.eup %1419 }
 0xc3f   :  { %v638_v56 = vmul.f32 %v1420_v55, %v1547_v21 }
 0xc41   :  { %v639_v57 = vadd.f32 %v1552_v23, %v638_v56 }
 0xc43   :  { %642 = vrot.lane.b32.xlu1 %v639_v57, %s1445_s3  ;;  %v640_v60 = vmul.f32 %v639_v57, %v544_v40 }
 0xcb5   :  { %v643_v58 = vpop.permute.xlu1 %642 }
 0xcb6   :  { %v645_v59 = vmul.f32 %v643_v58, %v639_v57 }
 0xcb8   :  { %647 = vrot.lane.b32.xlu0 %v645_v59, %s1446_s21 }
 0xd2a   :  { %v648_v61 = vpop.permute.xlu0 %647 }
 0xd2b   :  { %v650_v62 = vadd.f32 %v648_v61, %v640_v60 }
 0xd2d   :  { %1421 = vtanh.f32 %v650_v62 }
 0xd37   :  { %v1422_v63 = vpop.eup %1421 }
 0xd38   :  { %653 = vrot.lane.b32.xlu1 %v1422_v63, %s1445_s3 }
 0xd3c   :  { %83 = vperm.xlu1 %1392, %v52_v1  }
 0xdaa   :  { %v654_v2 = vpop.permute.xlu1 %653 }
 0xdab   :  { %v656_v3 = vmul.f32 %v654_v2, %v639_v57 }
 0xdad   :  { %658 = vrot.lane.b32.xlu0 %v656_v3, %s1446_s21 }
 0xdbb   :  { %v84_v7 = vpop.permute.xlu1 %83 }
 0xdbc   :  { %v107_v8 = vmul.f32 %v1535_v10, %v84_v7 }
 0xdbe   :  { %v122_v11 = vadd.f32 %v1541_v13, %v107_v8 }
 0xe1f   :  { %v659_v6 = vpop.permute.xlu0 %658 }
 0xe20   :  { %662 = vst.msk [vmem:[#allocation3 + $0x20] sm:$0xff] %vm134_vm1, %v659_v6  ;;  %1285 = vmatmul.mubr.msk.f32.vlgmr.msra.gmra.mrb[6].mxu1 %vm134_vm1, %v659_v6 }
 0xe21   :  { %1373 = vmatpush3.bf16.msra.mxu1 %v1504_v5  ;;  %1306 = vmatprep.mubr.msk.f32.mxu1 %vm1442_vm0, %v1443_v4 }
 0xe22   :  { %1374 = vmatprep.subr.bf16.mxu1 %v1441_v0 }
 0xe25   :  { %1376 = vmatpush3.bf16.msra.mxu1 %v1514_v9 }
 0xe27   :  { %v985_v40 = vld [vmem:[#allocation3 + $0x20] sm:$0xff] }
 0xef3   :  { %v733_v12 = vpop.f32.mrb[6].mxu1 }
 0xef4   :  { %v737_v14 = vadd.f32 %v733_v12, %v122_v11  ;;  %v1286_v15 = vpop.f32.mrb[7].mxu1 }
 0xef5   :  { %v54_v15 = vld [vmem:[%s1742_s0 + $0x38] sm:$0xff] }
 0xef6   :  { %v1155_v16 = vmul.f32 -1.442695, %v737_v14 }
 0xef8   :  { %1423 = vpow2.f32 %v1155_v16 }
 0xf02   :  { %v1424_v17 = vpop.eup %1423 }
 0xf03   :  { %v741_v18 = vadd.f32 1.0, %v1424_v17 }
 0xf05   :  { %1425 = vrcp.f32 %v741_v18 }
 0xf0f   :  { %v1426_v5 = vpop.eup %1425 }
 0xf10   :  { %v744_v4 = vmul.f32 %v1426_v5, %v1547_v21 }
 0xf12   :  { %v745_v0 = vadd.f32 %v1552_v23, %v744_v4 }
 0xf14   :  { %748 = vrot.lane.b32.xlu0 %v745_v0, %s1445_s3  ;;  %v746_v20 = vmul.f32 %v745_v0, %v650_v62 }
 0xf86   :  { %v749_v9 = vpop.permute.xlu0 %748 }
 0xf87   :  { %v751_v19 = vmul.f32 %v749_v9, %v745_v0 }
 0xf89   :  { %753 = vrot.lane.b32.xlu1 %v751_v19, %s1446_s21 }
 0xffb   :  { %v754_v22 = vpop.permute.xlu1 %753 }
 0xffc   :  { %v1651_v24 = vadd.f32 %v754_v22, %v746_v20 }
 0xffe   :  { %1427 = vtanh.f32 %v1651_v24 }
0x1008   :  { %v1428_v25 = vpop.eup %1427 }
0x1009   :  { %759 = vrot.lane.b32.xlu0 %v1428_v25, %s1445_s3 }
0x100d   :  { %88 = vperm.xlu0 %1391, %v53_v26  }
0x107b   :  { %v760_v30 = vpop.permute.xlu0 %759 }
0x107c   :  { %v762_v31 = vmul.f32 %v760_v30, %v745_v0 }
0x107e   :  { %764 = vrot.lane.b32.xlu1 %v762_v31, %s1446_s21 }
0x108c   :  { %v89_v42 = vpop.permute.xlu0 %88 }
0x108d   :  { %v108_v43 = vmul.f32 %v1535_v10, %v89_v42 }
0x108f   :  { %v123_v44 = vadd.f32 %v1541_v13, %v108_v43 }
0x10f0   :  { %v765_v35 = vpop.permute.xlu1 %764 }
0x10f1   :  { %768 = vst.msk [vmem:[#allocation3 + $0x28] sm:$0xff] %vm134_vm1, %v765_v35  ;;  %1296 = vmatmul.mubr.msk.f32.vlgmr.msra.gmra.mrb[4].mxu0 %vm134_vm1, %v765_v35 }
0x10f2   :  { %1380 = vmatpush3.bf16.msra.mxu0 %v1377_v29  ;;  %1317 = vmatprep.mubr.msk.f32.mxu0 %vm134_vm1, %v981_v36 }
0x10f3   :  { %1382 = vmatprep.subr.bf16.mxu0 %v1381_v34 }
0x10f6   :  { %1384 = vmatpush3.bf16.msra.mxu0 %v1381_v34 }
0x10f8   :  { %v986_v41 = vld [vmem:[#allocation3 + $0x28] sm:$0xff] }
0x10f9   :  { %1318 = vmatmul.mubr.msk.f32.vlgmr.msra.gmra.mrb[6].mxu0 %vm134_vm1, %v982_v37 }
0x10fa   :  { %1320 = vmatprep.mubr.msk.f32.mxu0 %vm134_vm1, %v983_v38 }
0x10fd   :  { %1321 = vmatmul.mubr.msk.f32.gmra.mrb[8].mxu0 %vm134_vm1, %v984_v39 }
0x10fe   :  { %1323 = vmatprep.mubr.msk.f32.mxu0 %vm134_vm1, %v985_v40 }
0x1101   :  { %1324 = vmatmul.mubr.msk.f32.gmra.mrb[10].mxu0 %vm134_vm1, %v986_v41 }
0x11c4   :  { %v839_v45 = vpop.f32.mrb[4].mxu0 }
0x11c5   :  { %v843_v46 = vadd.f32 %v839_v45, %v123_v44  ;;  %v1297_v47 = vpop.f32.mrb[5].mxu0 }
0x11c7   :  { %v1157_v48 = vmul.f32 -1.442695, %v843_v46 }
0x11c9   :  { %1429 = vpow2.f32 %v1157_v48 }
0x11cc   :  { %v1319_v50 = vpop.f32.mrb[6].mxu0 }
0x11cd   :  { %v1096_v51 = vadd.f32 %v1319_v50, %v1684_v49  ;;  %v1090_v52 = vpop.f32.mrb[7].mxu0 }
0x11ce   :  { %v1091_v53 = vadd.f32 %v1684_v49, %v1090_v52 }
0x11cf   :  { %1130 = vst [vmem:[%s1749_s8 + $0x8] sm:$0xff] %v1096_v51 }
0x11d0   :  { %1129 = vst [vmem:[%s1749_s8] sm:$0xff] %v1091_v53  ;;  %v1322_v54 = vpop.f32.mrb[8].mxu0 }
0x11d1   :  { %v1106_v55 = vadd.f32 %v1322_v54, %v1684_v49  ;;  %v1100_v56 = vpop.f32.mrb[9].mxu0 }
0x11d2   :  { %v1101_v57 = vadd.f32 %v1684_v49, %v1100_v56 }
0x11d3   :  { %v1430_v58 = vpop.eup %1429  ;;  %1132 = vst [vmem:[%s1749_s8 + $0x18] sm:$0xff] %v1106_v55 }
0x11d4   :  { %v847_v59 = vadd.f32 1.0, %v1430_v58  ;;  %1131 = vst [vmem:[%s1749_s8 + $0x10] sm:$0xff] %v1101_v57  ;;  %v1325_v60 = vpop.f32.mrb[10].mxu0 }
0x11d5   :  { %v1116_v61 = vadd.f32 %v1325_v60, %v1684_v49  ;;  %v1110_v62 = vpop.f32.mrb[11].mxu0 }
0x11d6   :  { %1431 = vrcp.f32 %v847_v59  ;;  %v1111_v63 = vadd.f32 %v1684_v49, %v1110_v62 }
0x11d7   :  { %1134 = vst [vmem:[%s1749_s8 + $0x28] sm:$0xff] %v1116_v61 }
0x11d8   :  { %1133 = vst [vmem:[%s1749_s8 + $0x20] sm:$0xff] %v1111_v63 }
0x11e0   :  { %v1432_v1 = vpop.eup %1431 }
0x11e1   :  { %v850_v2 = vmul.f32 %v1432_v1, %v1547_v21 }
0x11e3   :  { %v851_v3 = vadd.f32 %v1552_v23, %v850_v2 }
0x11e5   :  { %854 = vrot.lane.b32.xlu1 %v851_v3, %s1445_s3  ;;  %v852_v8 = vmul.f32 %v851_v3, %v1651_v24 }
0x1257   :  { %v855_v6 = vpop.permute.xlu1 %854 }
0x1258   :  { %v857_v7 = vmul.f32 %v855_v6, %v851_v3 }
0x125a   :  { %859 = vrot.lane.b32.xlu0 %v857_v7, %s1446_s21 }
0x12cc   :  { %v860_v11 = vpop.permute.xlu0 %859 }
0x12cd   :  { %v862_v12 = vadd.f32 %v860_v11, %v852_v8 }
0x12cf   :  { %1433 = vtanh.f32 %v862_v12 }
0x12d9   :  { %v1434_v14 = vpop.eup %1433 }
0x12da   :  { %865 = vrot.lane.b32.xlu1 %v1434_v14, %s1445_s3 }
0x12de   :  { %93 = vperm.xlu1 %1392, %v54_v15  }
0x134c   :  { %v866_v16 = vpop.permute.xlu1 %865 }
0x134d   :  { %v868_v17 = vmul.f32 %v866_v16, %v851_v3 }
0x134f   :  { %870 = vrot.lane.b32.xlu0 %v868_v17, %s1446_s21 }
0x135d   :  { %v94_v4 = vpop.permute.xlu1 %93 }
0x135e   :  { %v109_v0 = vmul.f32 %v1535_v10, %v94_v4 }
0x1360   :  { %v124_v9 = vadd.f32 %v1541_v13, %v109_v0 }
0x13c1   :  { %v871_v18 = vpop.permute.xlu0 %870 }
0x13c2   :  { %874 = vst.msk [vmem:[#allocation3 + $0x30] sm:$0xff] %vm134_vm1, %v871_v18  ;;  %1307 = vmatmul.mubr.msk.f32.vlgmr.msra.gmra.mrb[8].mxu1 %vm134_vm1, %v871_v18 }
0x13c9   :  { %v987_v5 = vld [vmem:[#allocation3 + $0x30] sm:$0xff] }
0x13ca   :  { %1326 = vmatprep.mubr.msk.f32.mxu0 %vm134_vm1, %v987_v5 }
0x1495   :  { %v945_v19 = vpop.f32.mrb[8].mxu1 }
0x1496   :  { %v949_v20 = vadd.f32 %v945_v19, %v124_v9  ;;  %v1308_v22 = vpop.f32.mrb[9].mxu1 }
0x1498   :  { %v1159_v24 = vmul.f32 -1.442695, %v949_v20 }
0x149a   :  { %1435 = vpow2.f32 %v1159_v24 }
0x14a4   :  { %v1436_v25 = vpop.eup %1435 }
0x14a5   :  { %v953_v26 = vadd.f32 1.0, %v1436_v25 }
0x14a7   :  { %1437 = vrcp.f32 %v953_v26 }
0x14b1   :  { %v1438_v27 = vpop.eup %1437 }
0x14b2   :  { %v956_v28 = vmul.f32 %v1438_v27, %v1547_v21 }
0x14b4   :  { %v957_v29 = vadd.f32 %v1552_v23, %v956_v28 }
0x14b6   :  { %960 = vrot.lane.b32.xlu0 %v957_v29, %s1445_s3  ;;  %v958_v10 = vmul.f32 %v957_v29, %v862_v12 }
0x1528   :  { %v961_v30 = vpop.permute.xlu0 %960 }
0x1529   :  { %v963_v31 = vmul.f32 %v961_v30, %v957_v29 }
0x152b   :  { %965 = vrot.lane.b32.xlu1 %v963_v31, %s1446_s21 }
0x159d   :  { %v966_v13 = vpop.permute.xlu1 %965 }
0x159e   :  { %v968_v32 = vadd.f32 %v966_v13, %v958_v10 }
0x15a0   :  { %1439 = vtanh.f32 %v968_v32 }
0x15aa   :  { %v1440_v33 = vpop.eup %1439 }
0x15ab   :  { %971 = vrot.lane.b32.xlu0 %v1440_v33, %s1445_s3 }
0x161d   :  { %v972_v34 = vpop.permute.xlu0 %971 }
0x161e   :  { %v974_v35 = vmul.f32 %v972_v34, %v957_v29 }
0x1620   :  { %976 = vrot.lane.b32.xlu1 %v974_v35, %s1446_s21 }
0x1692   :  { %v977_v21 = vpop.permute.xlu1 %976 }
0x1693   :  { %980 = vst.msk [vmem:[#allocation3 + $0x38] sm:$0xff] %vm134_vm1, %v977_v21 }
0x169a   :  { %v988_v23 = vld [vmem:[#allocation3 + $0x38] sm:$0xff] }
0x169b   :  { %1327 = vmatmul.mubr.msk.f32.gmra.mrb[12].mxu0 %vm134_vm1, %v988_v23 }
0x176e   :  { %v1328_v36 = vpop.f32.mrb[12].mxu0 }
0x176f   :  { %v1126_v37 = vadd.f32 %v1328_v36, %v1684_v49  ;;  %v1120_v38 = vpop.f32.mrb[13].mxu0 }
0x1770   :  { %v1121_v39 = vadd.f32 %v1684_v49, %v1120_v38 }
0x1771   :  { %1136 = vst [vmem:[%s1749_s8 + $0x38] sm:$0xff] %v1126_v37 }
0x1772   :  { %1135 = vst [vmem:[%s1749_s8 + $0x30] sm:$0xff] %v1121_v39 }

</bundles_post_ra>
